<compile_context>
chip_gen: v7x
topology: tpu7x:2x2x1
jax: 0.10.0
libtpu: 0.0.40
codegen_flags: <defaults>
</compile_context>

<pallas_src>
import functools
from typing import NamedTuple, Any

import jax
import jax.numpy as jnp
import numpy as np
from jax.experimental import pallas as pl
from jax.experimental.pallas import tpu as pltpu

ZP = 64.0        # torch.quantize_per_tensor(..., zero_point=64, dtype=quint8)
BN_EPS = 1e-5

# SMEM scales layout: [s_x, 1/s_x, s1, 1/s1, s2, 1/s2, s3, 1/s3,
#                      s_add, 1/s_add, s_sc, 1/s_sc]
_SX, _ISX, _S1, _IS1, _S2, _IS2, _S3, _IS3, _SA, _ISA, _SS, _ISS = range(12)


def _fq(v, scale, inv_scale):
    """Simulated quint8 quantize->clamp->dequantize (zero_point=64).
    `inv_scale` is a precomputed reciprocal so the requant path is
    multiply-only (no per-element divide)."""
    q = jnp.clip(jnp.round(v * inv_scale) + ZP, 0.0, 255.0)
    return (q - ZP) * scale


# ------------------------------ fused kernels -------------------------------- #

def _qfw_kernel_roll(scales_ref, x_ref, w1_ref, b1_ref, cmask_ref,
                     w2_ref, b2_ref, rmask_ref, w3_ref, b3_ref, *rest,
                     P, TM, has_sc, mxu_dtype):
    """stride == 1 path.  Activation layout: rows=(n,h), lanes=w*C+c.

      x_ref    : (TM, W*Cin)   raw f32 input slab (one group of whole images)
      w1_ref   : (W*Cin, W*P)  conv1 weights, block-diagonal over W   [bf16]
      b1_ref   : (1, W*P)
      cmask_ref: (2, W*P)      0/1 lane masks for the dx=0 / dx=2 column taps
      w2_ref   : (9, W*P)      depthwise 3x3 per-channel weights, tiled over W
      b2_ref   : (1, W*P)
      rmask_ref: (2, TM, 1)    0/1 row masks for the dy=0 / dy=2 row taps
      w3_ref   : (W*P, W*Cout) conv3 weights, block-diagonal over W   [bf16]
      b3_ref   : (1, W*Cout)
      [wsc_ref : (W*Cin, W*Cout), bsc_ref: (1, W*Cout)]  optional shortcut conv
      o_ref    : (TM, W*Cout)  lane-dense output slab
    """
    if has_sc:
        wsc_ref, bsc_ref, o_ref = rest
    else:
        (o_ref,) = rest
        wsc_ref = bsc_ref = None
    WP = w1_ref.shape[1]

    s_x, inv_sx = scales_ref[_SX], scales_ref[_ISX]
    s1, inv_s1 = scales_ref[_S1], scales_ref[_IS1]
    s2, inv_s2 = scales_ref[_S2], scales_ref[_IS2]
    s3, inv_s3 = scales_ref[_S3], scales_ref[_IS3]

    # -- input fake-quant (scale computed in the wrapper; no in-kernel reduce)
    xq = _fq(x_ref[...], s_x, inv_sx)                        # (TM, W*Cin) f32
    xq_m = xq.astype(mxu_dtype)

    # -- conv1 (1x1 expand) + BN + ReLU + requant, ONE block-diagonal matmul
    c = jnp.dot(xq_m, w1_ref[...], preferred_element_type=jnp.float32)
    c = _fq(jnp.maximum(c + b1_ref[...], 0.0), s1, inv_s1)   # (TM, W*P)

    # -- dx = -1 / +1 column taps: XLU lane rolls by +-P lanes + halo masks.
    #    Wrapped lanes are exactly the masked ones -> exact zero padding.
    a0 = pltpu.roll(c, P, axis=1) * cmask_ref[0]             # column w-1
    a1 = c                                                   # column w
    a2 = pltpu.roll(c, WP - P, axis=1) * cmask_ref[1]        # column w+1

    # -- depthwise 3x3 (stride 1): dy taps are +-1 sublane rolls + row masks
    def drow(dy):
        return (a0 * w2_ref[3 * dy + 0, :]
                + a1 * w2_ref[3 * dy + 1, :]
                + a2 * w2_ref[3 * dy + 2, :])                # (TM, W*P)

    pre = (pltpu.roll(drow(0), 1, axis=0) * rmask_ref[0]     # row h-1
           + drow(1)                                          # row h
           + pltpu.roll(drow(2), TM - 1, axis=0) * rmask_ref[1])  # row h+1
    dw = _fq(jnp.maximum(pre + b2_ref[...], 0.0), s2, inv_s2)

    # -- conv3 (1x1 project, block-diagonal over W) + BN (no ReLU) + requant
    y = jnp.dot(dw.astype(mxu_dtype), w3_ref[...],
                preferred_element_type=jnp.float32) + b3_ref[...]
    y = _fq(y, s3, inv_s3)                                   # (TM, W*Cout)

    # -- shortcut + quantized add (stride == 1 always has the add)
    s_add, inv_s_add = scales_ref[_SA], scales_ref[_ISA]
    if has_sc:
        s_sc, inv_s_sc = scales_ref[_SS], scales_ref[_ISS]
        sc = jnp.dot(xq_m, wsc_ref[...],
                     preferred_element_type=jnp.float32) + bsc_ref[...]
        sc = _fq(sc, s_sc, inv_s_sc)
    else:
        sc = xq          # identity shortcut (Cin == Cout, identical layout)
    o_ref[...] = _fq(y + sc, s_add, inv_s_add)


def _qfw_kernel_banded(scales_ref, x_ref, w1s_ref, b1s_ref, w2_ref, b2_ref,
                       d_ref, w3_ref, b3_ref, o_ref, *, mxu_dtype):
    """stride > 1 fallback (no residual add in the module for stride > 1).

      x_ref  : (TM, W*Cin)        TM = G*H rows (G whole images per block)
      w1s_ref: (3, W*Cin, Wo*P)   banded conv1 weights, one matrix per dx tap
                                  (stride + W halo folded in)          [bf16]
      b1s_ref: (3, Wo*P)          matching biases (0 on padded columns)
      w2_ref : (9, Wo*P), b2_ref: (1, Wo*P)
      d_ref  : (3, TMo, TM)       0/1 row-select matrices (H halo + stride)
      w3_ref : (Wo*P, Wo*Cout)    block-diagonal over Wo               [bf16]
      b3_ref : (1, Wo*Cout)
      o_ref  : (TMo, Wo*Cout)     TMo = G*Ho
    """
    s_x, inv_sx = scales_ref[_SX], scales_ref[_ISX]
    s1, inv_s1 = scales_ref[_S1], scales_ref[_IS1]
    s2, inv_s2 = scales_ref[_S2], scales_ref[_IS2]
    s3, inv_s3 = scales_ref[_S3], scales_ref[_IS3]

    xq_m = _fq(x_ref[...], s_x, inv_sx).astype(mxu_dtype)

    a = []
    for dx in range(3):
        t = jnp.dot(xq_m, w1s_ref[dx], preferred_element_type=jnp.float32)
        a.append(_fq(jnp.maximum(t + b1s_ref[dx], 0.0), s1, inv_s1))

    pre = None
    for dy in range(3):
        b_dy = (a[0] * w2_ref[3 * dy + 0, :]
                + a[1] * w2_ref[3 * dy + 1, :]
                + a[2] * w2_ref[3 * dy + 2, :])
        t = jnp.dot(d_ref[dy], b_dy, preferred_element_type=jnp.float32)
        pre = t if pre is None else pre + t
    dw = _fq(jnp.maximum(pre + b2_ref[...], 0.0), s2, inv_s2)

    y = jnp.dot(dw.astype(mxu_dtype), w3_ref[...],
                preferred_element_type=jnp.float32) + b3_ref[...]
    o_ref[...] = _fq(y, s3, inv_s3)


# --------------------- constant weight preprocessing ------------------------- #
# All of this runs exactly ONCE per parameter set inside prepare_qfw_block.

def _block_diag(w, reps):
    """w:(A,B) -> block-diagonal (reps*A, reps*B)."""
    A, B = w.shape
    eye = jnp.eye(reps, dtype=w.dtype)
    return jnp.einsum('rs,ab->rasb', eye, w).reshape(reps * A, reps * B)


def _build_conv1_dx_weights(w1, b1, W, Wo, stride):
    """w1:(Cin,P), b1:(1,P) -> w1s:(3, W*Cin, Wo*P), b1s:(3, Wo*P)."""
    Cin, P = w1.shape
    sel = np.zeros((3, W, Wo), np.float32)        # sel[dx, w_in, w_out]
    valid = np.zeros((3, Wo), np.float32)
    for dx in range(3):
        for wo in range(Wo):
            wi = stride * wo + dx - 1
            if 0 <= wi < W:
                sel[dx, wi, wo] = 1.0
                valid[dx, wo] = 1.0
    sel = jnp.asarray(sel)
    valid = jnp.asarray(valid)
    w1s = jnp.einsum('dio,cp->dicop', sel, w1).reshape(3, W * Cin, Wo * P)
    b1s = jnp.einsum('do,p->dop', valid, b1[0]).reshape(3, Wo * P)
    return w1s, b1s


def _build_row_select(G, H, Ho, stride):
    """0/1 matrices d[dy]: output row (g,ho) <- input row (g, stride*ho+dy-1)."""
    d = np.zeros((3, G * Ho, G * H), np.float32)
    for dy in range(3):
        for g in range(G):
            for ho in range(Ho):
                hi = stride * ho + dy - 1
                if 0 <= hi < H:
                    d[dy, g * Ho + ho, g * H + hi] = 1.0
    return jnp.asarray(d)


def _choose_group(N, H, target_rows):
    """Largest divisor G of N with G*H <= target_rows (rows per grid block)."""
    g = 1
    for cand in range(1, N + 1):
        if N % cand == 0 and cand * H <= target_rows:
            g = cand
    return g


def _const_spec(shape):
    """Full-array block, constant index_map -> stays VMEM-resident across grid."""
    nd = len(shape)
    return pl.BlockSpec(tuple(shape), lambda i, _nd=nd: (0,) * _nd)


class QFWConfig(NamedTuple):
    N: int
    H: int
    W: int
    Cin: int
    P: int
    Cout: int
    stride: int
    Ho: int
    Wo: int
    G: int
    TM: int
    TMo: int
    has_sc: bool
    mxu_dtype: Any


def prepare_qfw_block(params, *, N, H, W, stride,
                      mxu_dtype=jnp.bfloat16, target_rows=256):
    """Fold everything that only depends on the parameters / static shapes into
    matmul & elementwise operands ONCE (hoisted out of the per-call path)."""
    Cin, P = params['w1'].shape
    Cout = params['w3'].shape[1]
    Ho = (H - 1) // stride + 1
    Wo = (W - 1) // stride + 1
    G = _choose_group(N, H, target_rows)
    TM, TMo = G * H, G * Ho
    has_add = (stride == 1)
    has_sc = has_add and (params.get('w_sc') is not None)
    if has_add and not has_sc:
        assert Cin == Cout, "identity shortcut requires in_planes == out_planes"

    w = {}
    if stride == 1:
        w['w1bd'] = _block_diag(params['w1'], W).astype(mxu_dtype)
        w['b1'] = jnp.tile(params['b1'], (1, W))
        cm = np.ones((2, W * P), np.float32)
        cm[0, :P] = 0.0                     # dx=0 tap: no column left of w=0
        cm[1, (W - 1) * P:] = 0.0           # dx=2 tap: no column right of W-1
        w['cmask'] = jnp.asarray(cm)
        w['w2'] = jnp.tile(params['w2'], (1, W))
        w['b2'] = jnp.tile(params['b2'], (1, W))
        rm = np.ones((2, TM, 1), np.float32)
        hh = np.arange(TM) % H
        rm[0, hh == 0, 0] = 0.0             # dy=0 tap: no row above h=0
        rm[1, hh == H - 1, 0] = 0.0         # dy=2 tap: no row below h=H-1
        w['rmask'] = jnp.asarray(rm)
        w['w3bd'] = _block_diag(params['w3'], W).astype(mxu_dtype)
        w['b3'] = jnp.tile(params['b3'], (1, W))
        if has_sc:
            w['wscbd'] = _block_diag(params['w_sc'], W).astype(mxu_dtype)
            w['bsc'] = jnp.tile(params['b_sc'], (1, W))
    else:
        w1s, b1s = _build_conv1_dx_weights(params['w1'], params['b1'],
                                           W, Wo, stride)
        w['w1s'] = w1s.astype(mxu_dtype)
        w['b1s'] = b1s
        w['w2'] = jnp.tile(params['w2'], (1, Wo))
        w['b2'] = jnp.tile(params['b2'], (1, Wo))
        w['dsel'] = _build_row_select(G, H, Ho, stride)
        w['w3bd'] = _block_diag(params['w3'], Wo).astype(mxu_dtype)
        w['b3'] = jnp.tile(params['b3'], (1, Wo))

    def _pair(s):
        s = float(s)
        return [s, 1.0 / s]

    tail = (_pair(params['s1']) + _pair(params['s2']) + _pair(params['s3'])
            + (_pair(params['s_add']) if has_add else [1.0, 1.0])
            + (_pair(params['s_sc']) if has_sc else [1.0, 1.0]))
    scales_tail = jnp.asarray(tail, jnp.float32)    # (10,)

    cfg = QFWConfig(N=N, H=H, W=W, Cin=Cin, P=P, Cout=Cout, stride=stride,
                    Ho=Ho, Wo=Wo, G=G, TM=TM, TMo=TMo,
                    has_sc=has_sc, mxu_dtype=mxu_dtype)
    return w, scales_tail, cfg


# ------------------------------ block forward -------------------------------- #

def qfw_block_forward(x_nchw, weights, scales_tail, cfg):
    """Jittable forward.  `weights`/`scales_tail` come from prepare_qfw_block
    (precomputed once); `cfg` is a static config."""
    N, H, W, Cin, Cout = cfg.N, cfg.H, cfg.W, cfg.Cin, cfg.Cout
    Ho, Wo, G, TM, TMo = cfg.Ho, cfg.Wo, cfg.G, cfg.TM, cfg.TMo

    # NCHW -> lane-dense slab (rows=(n,h), lanes=w*C+c).  Only at model
    # entry/exit; intermediates never leave VMEM.
    x_slab = (jnp.transpose(x_nchw, (0, 2, 3, 1))
              .reshape(N * H, W * Cin).astype(jnp.float32))

    # Dynamic input quant scale computed OUTSIDE the kernel (no in-kernel
    # serializing reduction).
    # TODO(synk): exact torch tensor_scale()/observer semantics unavailable;
    # abs-max/127 with zero_point=64 is used (clamps negatives beyond -64*s_x).
    amax = jnp.maximum(jnp.max(jnp.abs(x_slab)), 1e-12)
    scales = jnp.concatenate(
        [jnp.stack([amax * (1.0 / 127.0), 127.0 / amax]), scales_tail]
    ).astype(jnp.float32)

    nb = N // G
    smem_spec = pl.BlockSpec(memory_space=pltpu.MemorySpace.SMEM)
    x_spec = pl.BlockSpec((TM, W * Cin), lambda i: (i, 0))

    if cfg.stride == 1:
        names = ['w1bd', 'b1', 'cmask', 'w2', 'b2', 'rmask', 'w3bd', 'b3']
        if cfg.has_sc:
            names += ['wscbd', 'bsc']
        args = [weights[k] for k in names]
        kern = functools.partial(_qfw_kernel_roll, P=cfg.P, TM=TM,
                                 has_sc=cfg.has_sc, mxu_dtype=cfg.mxu_dtype)
        out_rows, out_lanes = TM, W * Cout
    else:
        names = ['w1s', 'b1s', 'w2', 'b2', 'dsel', 'w3bd', 'b3']
        args = [weights[k] for k in names]
        kern = functools.partial(_qfw_kernel_banded, mxu_dtype=cfg.mxu_dtype)
        out_rows, out_lanes = TMo, Wo * Cout

    in_specs = [smem_spec, x_spec] + [_const_spec(a.shape) for a in args]
    out_spec = pl.BlockSpec((out_rows, out_lanes), lambda i: (i, 0))

    out_slab = pl.pallas_call(
        kern,
        out_shape=jax.ShapeDtypeStruct((nb * out_rows, out_lanes), jnp.float32),
        grid=(nb,),
        in_specs=in_specs,
        out_specs=out_spec,
        compiler_params=pltpu.CompilerParams(
            dimension_semantics=("parallel",)),
    )(scales, x_slab, *args)

    out = jnp.transpose(out_slab.reshape(N, Ho, Wo, Cout), (0, 3, 1, 2))
    # is_transition: torch.dequantize() is a no-op in this fake-quant (f32)
    # representation.
    return out


# ------------------------- parameter construction ---------------------------- #

def init_qconv_bn(key, cin, cout, *, depthwise=False):
    """Deterministic conv + BN params with BN folded into (w, b)."""
    kw, kg, kb, km, kv = jax.random.split(key, 5)
    if depthwise:
        w = 0.2 * jax.random.normal(kw, (cout, 3, 3), jnp.float32)   # (C,1,3,3)
    else:
        w = 0.2 * jax.random.normal(kw, (cout, cin), jnp.float32)    # (Co,Ci,1,1)
    gamma = 0.5 + jax.random.uniform(kg, (cout,), jnp.float32)
    beta = 0.1 * jax.random.normal(kb, (cout,), jnp.float32)
    mean = 0.1 * jax.random.normal(km, (cout,), jnp.float32)
    var = 0.5 + jax.random.uniform(kv, (cout,), jnp.float32)
    inv = gamma / jnp.sqrt(var + BN_EPS)
    bias = (beta - mean * inv).reshape(1, cout)
    if depthwise:
        w_fold = (w * inv[:, None, None]).reshape(cout, 9).T         # (9, C)
    else:
        w_fold = w.T * inv[None, :]                                  # (Cin, Cout)
    return w_fold, bias


# ---------------------------------- main -------------------------------------- #

if __name__ == "__main__":
    key = jax.random.PRNGKey(0)
    kx, k1, k2, k3, ksc, kx2, k1b, k2b, k3b = jax.random.split(key, 9)
    fwd = jax.jit(qfw_block_forward, static_argnames=("cfg",))

    # ---- stride=1 block with 1x1-conv shortcut (in_planes != out_planes) ----
    N, H, W = 2, 8, 8
    in_planes, out_planes, expansion, stride = 8, 16, 2, 1
    planes = expansion * in_planes
    x = jax.random.normal(kx, (N, in_planes, H, W), jnp.float32)      # NCHW

    w1, b1 = init_qconv_bn(k1, in_planes, planes)
    w2, b2 = init_qconv_bn(k2, planes, planes, depthwise=True)
    w3, b3 = init_qconv_bn(k3, planes, out_planes)
    w_sc, b_sc = init_qconv_bn(ksc, in_planes, out_planes)
    params = dict(w1=w1, b1=b1, s1=0.05,          # op_scale of convbn1relu
                  w2=w2, b2=b2, s2=0.04,          # op_scale of convbn2relu
                  w3=w3, b3=b3, s3=0.06,          # op_scale of convbn3
                  s_add=0.07,                     # op_scale of QAdd
                  w_sc=w_sc, b_sc=b_sc, s_sc=0.05)

    weights, tail, cfg = prepare_qfw_block(params, N=N, H=H, W=W, stride=stride)
    out = fwd(x, weights, tail, cfg=cfg)
    jax.block_until_ready(out)
    assert out.shape == (N, out_planes, H, W)
    assert bool(jnp.all(jnp.isfinite(out)))

    # ---- stride=2 block (no residual add): exercises the banded fallback ----
    in_planes2, out_planes2, expansion2, stride2 = 8, 32, 4, 2
    planes2 = expansion2 * in_planes2
    x2 = jax.random.normal(kx2, (N, in_planes2, H, W), jnp.float32)

    w1b_, b1b_ = init_qconv_bn(k1b, in_planes2, planes2)
    w2b_, b2b_ = init_qconv_bn(k2b, planes2, planes2, depthwise=True)
    w3b_, b3b_ = init_qconv_bn(k3b, planes2, out_planes2)
    params2 = dict(w1=w1b_, b1=b1b_, s1=0.05, w2=w2b_, b2=b2b_, s2=0.04,
                   w3=w3b_, b3=b3b_, s3=0.06, s_add=0.07, w_sc=None)

    weights2, tail2, cfg2 = prepare_qfw_block(params2, N=N, H=H, W=W,
                                              stride=stride2)
    out2 = fwd(x2, weights2, tail2, cfg=cfg2)
    jax.block_until_ready(out2)
    assert out2.shape == (N, out_planes2, (H - 1) // stride2 + 1,
                          (W - 1) // stride2 + 1)
    assert bool(jnp.all(jnp.isfinite(out2)))

    print("KERNEL_OK")
</pallas_src>

<mosaic_0001>
module attributes {stable_mosaic.version = 11 : i64} {
  func.func @_qfw_kernel_roll(%arg0: i32, %arg1: memref<12xf32, #tpu.memory_space<smem>>, %arg2: memref<16x64xf32, #tpu.memory_space<vmem>>, %arg3: memref<64x128xbf16, #tpu.memory_space<vmem>>, %arg4: memref<1x128xf32, #tpu.memory_space<vmem>>, %arg5: memref<2x128xf32, #tpu.memory_space<vmem>>, %arg6: memref<9x128xf32, #tpu.memory_space<vmem>>, %arg7: memref<1x128xf32, #tpu.memory_space<vmem>>, %arg8: memref<2x16x1xf32, #tpu.memory_space<vmem>>, %arg9: memref<128x128xbf16, #tpu.memory_space<vmem>>, %arg10: memref<1x128xf32, #tpu.memory_space<vmem>>, %arg11: memref<64x128xbf16, #tpu.memory_space<vmem>>, %arg12: memref<1x128xf32, #tpu.memory_space<vmem>>, %arg13: memref<16x128xf32, #tpu.memory_space<vmem>>) attributes {dimension_semantics = [#tpu.dimension_semantics<parallel>], iteration_bounds = array<i64: 1>, scalar_prefetch = 0 : i64, scratch_operands = 0 : i64, tpu.core_type = #tpu.core_type<tc>, window_params = [{transform_indices = @transform_0, window_bounds = array<i64: 12>}, {transform_indices = @transform_1, window_bounds = array<i64: 16, 64>}, {pipeline_mode = #tpu.pipeline_mode<synchronous>, transform_indices = @transform_2, window_bounds = array<i64: 64, 128>}, {pipeline_mode = #tpu.pipeline_mode<synchronous>, transform_indices = @transform_3, window_bounds = array<i64: 1, 128>}, {pipeline_mode = #tpu.pipeline_mode<synchronous>, transform_indices = @transform_4, window_bounds = array<i64: 2, 128>}, {pipeline_mode = #tpu.pipeline_mode<synchronous>, transform_indices = @transform_5, window_bounds = array<i64: 9, 128>}, {pipeline_mode = #tpu.pipeline_mode<synchronous>, transform_indices = @transform_6, window_bounds = array<i64: 1, 128>}, {pipeline_mode = #tpu.pipeline_mode<synchronous>, transform_indices = @transform_7, window_bounds = array<i64: 2, 16, 1>}, {pipeline_mode = #tpu.pipeline_mode<synchronous>, transform_indices = @transform_8, window_bounds = array<i64: 128, 128>}, {pipeline_mode = #tpu.pipeline_mode<synchronous>, transform_indices = @transform_9, window_bounds = array<i64: 1, 128>}, {pipeline_mode = #tpu.pipeline_mode<synchronous>, transform_indices = @transform_10, window_bounds = array<i64: 64, 128>}, {pipeline_mode = #tpu.pipeline_mode<synchronous>, transform_indices = @transform_11, window_bounds = array<i64: 1, 128>}, {transform_indices = @transform_12, window_bounds = array<i64: 16, 128>}]} {
    %c0 = arith.constant 0 : index
    %0 = memref.load %arg1[%c0] : memref<12xf32, #tpu.memory_space<smem>>
    %c1 = arith.constant 1 : index
    %1 = memref.load %arg1[%c1] : memref<12xf32, #tpu.memory_space<smem>>
    %c2 = arith.constant 2 : index
    %2 = memref.load %arg1[%c2] : memref<12xf32, #tpu.memory_space<smem>>
    %c3 = arith.constant 3 : index
    %3 = memref.load %arg1[%c3] : memref<12xf32, #tpu.memory_space<smem>>
    %c4 = arith.constant 4 : index
    %4 = memref.load %arg1[%c4] : memref<12xf32, #tpu.memory_space<smem>>
    %c5 = arith.constant 5 : index
    %5 = memref.load %arg1[%c5] : memref<12xf32, #tpu.memory_space<smem>>
    %c6 = arith.constant 6 : index
    %6 = memref.load %arg1[%c6] : memref<12xf32, #tpu.memory_space<smem>>
    %c7 = arith.constant 7 : index
    %7 = memref.load %arg1[%c7] : memref<12xf32, #tpu.memory_space<smem>>
    %c0_0 = arith.constant 0 : index
    %c0_1 = arith.constant 0 : index
    %8 = vector.load %arg2[%c0_0, %c0_1] : memref<16x64xf32, #tpu.memory_space<vmem>>, vector<16x64xf32>
    %9 = vector.broadcast %1 : f32 to vector<16x64xf32>
    %10 = arith.mulf %8, %9 : vector<16x64xf32>
    %11 = math.roundeven %10 : vector<16x64xf32>
    %cst = arith.constant 6.400000e+01 : f32
    %12 = vector.broadcast %cst : f32 to vector<16x64xf32>
    %13 = arith.addf %11, %12 : vector<16x64xf32>
    %cst_2 = arith.constant 0.000000e+00 : f32
    %cst_3 = arith.constant 2.550000e+02 : f32
    %14 = vector.broadcast %cst_2 : f32 to vector<16x64xf32>
    %15 = arith.maximumf %14, %13 : vector<16x64xf32>
    %16 = vector.broadcast %cst_3 : f32 to vector<16x64xf32>
    %17 = arith.minimumf %16, %15 : vector<16x64xf32>
    %cst_4 = arith.constant 6.400000e+01 : f32
    %18 = vector.broadcast %cst_4 : f32 to vector<16x64xf32>
    %19 = arith.subf %17, %18 : vector<16x64xf32>
    %20 = vector.broadcast %0 : f32 to vector<16x64xf32>
    %21 = arith.mulf %19, %20 : vector<16x64xf32>
    %22 = arith.truncf %21 : vector<16x64xf32> to vector<16x64xbf16>
    %c0_5 = arith.constant 0 : index
    %c0_6 = arith.constant 0 : index
    %23 = vector.load %arg3[%c0_5, %c0_6] : memref<64x128xbf16, #tpu.memory_space<vmem>>, vector<64x128xbf16>
    %cst_7 = arith.constant dense<0.000000e+00> : vector<16x128xf32>
    %24 = tpu.matmul %22, %23, %cst_7 {dimension_numbers = #tpu.dot_dimension_numbers<[1], [0], [0], [1], [0, 0, 1, 1], [], []>} : vector<16x64xbf16>, vector<64x128xbf16>, vector<16x128xf32> -> vector<16x128xf32>
    %c0_8 = arith.constant 0 : index
    %c0_9 = arith.constant 0 : index
    %25 = vector.load %arg4[%c0_8, %c0_9] : memref<1x128xf32, #tpu.memory_space<vmem>>, vector<1x128xf32>
    %26 = vector.broadcast %25 : vector<1x128xf32> to vector<16x128xf32>
    %27 = arith.addf %24, %26 : vector<16x128xf32>
    %cst_10 = arith.constant 0.000000e+00 : f32
    %28 = vector.broadcast %cst_10 : f32 to vector<16x128xf32>
    %29 = arith.maximumf %27, %28 : vector<16x128xf32>
    %30 = vector.broadcast %3 : f32 to vector<16x128xf32>
    %31 = arith.mulf %29, %30 : vector<16x128xf32>
    %32 = math.roundeven %31 : vector<16x128xf32>
    %cst_11 = arith.constant 6.400000e+01 : f32
    %33 = vector.broadcast %cst_11 : f32 to vector<16x128xf32>
    %34 = arith.addf %32, %33 : vector<16x128xf32>
    %cst_12 = arith.constant 0.000000e+00 : f32
    %cst_13 = arith.constant 2.550000e+02 : f32
    %35 = vector.broadcast %cst_12 : f32 to vector<16x128xf32>
    %36 = arith.maximumf %35, %34 : vector<16x128xf32>
    %37 = vector.broadcast %cst_13 : f32 to vector<16x128xf32>
    %38 = arith.minimumf %37, %36 : vector<16x128xf32>
    %cst_14 = arith.constant 6.400000e+01 : f32
    %39 = vector.broadcast %cst_14 : f32 to vector<16x128xf32>
    %40 = arith.subf %38, %39 : vector<16x128xf32>
    %41 = vector.broadcast %2 : f32 to vector<16x128xf32>
    %42 = arith.mulf %40, %41 : vector<16x128xf32>
    %c16_i32 = arith.constant 16 : i32
    %43 = tpu.dynamic_rotate %42 by %c16_i32 dim 1 : vector<16x128xf32>, i32 -> vector<16x128xf32>
    %c0_15 = arith.constant 0 : index
    %c0_16 = arith.constant 0 : index
    %44 = vector.load %arg5[%c0_15, %c0_16] : memref<2x128xf32, #tpu.memory_space<vmem>>, vector<1x128xf32>
    %45 = vector.shape_cast %44 : vector<1x128xf32> to vector<128xf32>
    %46 = vector.shape_cast %45 : vector<128xf32> to vector<1x128xf32>
    %47 = vector.broadcast %46 : vector<1x128xf32> to vector<16x128xf32>
    %48 = arith.mulf %43, %47 : vector<16x128xf32>
    %c112_i32 = arith.constant 112 : i32
    %49 = tpu.dynamic_rotate %42 by %c112_i32 dim 1 : vector<16x128xf32>, i32 -> vector<16x128xf32>
    %c1_17 = arith.constant 1 : index
    %c0_18 = arith.constant 0 : index
    %50 = vector.load %arg5[%c1_17, %c0_18] : memref<2x128xf32, #tpu.memory_space<vmem>>, vector<1x128xf32>
    %51 = vector.shape_cast %50 : vector<1x128xf32> to vector<128xf32>
    %52 = vector.shape_cast %51 : vector<128xf32> to vector<1x128xf32>
    %53 = vector.broadcast %52 : vector<1x128xf32> to vector<16x128xf32>
    %54 = arith.mulf %49, %53 : vector<16x128xf32>
    %c0_19 = arith.constant 0 : index
    %c0_20 = arith.constant 0 : index
    %55 = vector.load %arg6[%c0_19, %c0_20] : memref<9x128xf32, #tpu.memory_space<vmem>>, vector<1x128xf32>
    %56 = vector.shape_cast %55 : vector<1x128xf32> to vector<128xf32>
    %57 = vector.shape_cast %56 : vector<128xf32> to vector<1x128xf32>
    %58 = vector.broadcast %57 : vector<1x128xf32> to vector<16x128xf32>
    %59 = arith.mulf %48, %58 : vector<16x128xf32>
    %c1_21 = arith.constant 1 : index
    %c0_22 = arith.constant 0 : index
    %60 = vector.load %arg6[%c1_21, %c0_22] : memref<9x128xf32, #tpu.memory_space<vmem>>, vector<1x128xf32>
    %61 = vector.shape_cast %60 : vector<1x128xf32> to vector<128xf32>
    %62 = vector.shape_cast %61 : vector<128xf32> to vector<1x128xf32>
    %63 = vector.broadcast %62 : vector<1x128xf32> to vector<16x128xf32>
    %64 = arith.mulf %42, %63 : vector<16x128xf32>
    %65 = arith.addf %59, %64 : vector<16x128xf32>
    %c2_23 = arith.constant 2 : index
    %c0_24 = arith.constant 0 : index
    %66 = vector.load %arg6[%c2_23, %c0_24] : memref<9x128xf32, #tpu.memory_space<vmem>>, vector<1x128xf32>
    %67 = vector.shape_cast %66 : vector<1x128xf32> to vector<128xf32>
    %68 = vector.shape_cast %67 : vector<128xf32> to vector<1x128xf32>
    %69 = vector.broadcast %68 : vector<1x128xf32> to vector<16x128xf32>
    %70 = arith.mulf %54, %69 : vector<16x128xf32>
    %71 = arith.addf %65, %70 : vector<16x128xf32>
    %c1_i32 = arith.constant 1 : i32
    %72 = tpu.dynamic_rotate %71 by %c1_i32 dim 0 : vector<16x128xf32>, i32 -> vector<16x128xf32>
    %c0_25 = arith.constant 0 : index
    %c0_26 = arith.constant 0 : index
    %c0_27 = arith.constant 0 : index
    %73 = vector.load %arg8[%c0_25, %c0_26, %c0_27] : memref<2x16x1xf32, #tpu.memory_space<vmem>>, vector<1x16x1xf32>
    %74 = vector.shape_cast %73 : vector<1x16x1xf32> to vector<16x1xf32>
    %75 = vector.broadcast %74 : vector<16x1xf32> to vector<16x128xf32>
    %76 = arith.mulf %72, %75 : vector<16x128xf32>
    %c3_28 = arith.constant 3 : index
    %c0_29 = arith.constant 0 : index
    %77 = vector.load %arg6[%c3_28, %c0_29] : memref<9x128xf32, #tpu.memory_space<vmem>>, vector<1x128xf32>
    %78 = vector.shape_cast %77 : vector<1x128xf32> to vector<128xf32>
    %79 = vector.shape_cast %78 : vector<128xf32> to vector<1x128xf32>
    %80 = vector.broadcast %79 : vector<1x128xf32> to vector<16x128xf32>
    %81 = arith.mulf %48, %80 : vector<16x128xf32>
    %c4_30 = arith.constant 4 : index
    %c0_31 = arith.constant 0 : index
    %82 = vector.load %arg6[%c4_30, %c0_31] : memref<9x128xf32, #tpu.memory_space<vmem>>, vector<1x128xf32>
    %83 = vector.shape_cast %82 : vector<1x128xf32> to vector<128xf32>
    %84 = vector.shape_cast %83 : vector<128xf32> to vector<1x128xf32>
    %85 = vector.broadcast %84 : vector<1x128xf32> to vector<16x128xf32>
    %86 = arith.mulf %42, %85 : vector<16x128xf32>
    %87 = arith.addf %81, %86 : vector<16x128xf32>
    %c5_32 = arith.constant 5 : index
    %c0_33 = arith.constant 0 : index
    %88 = vector.load %arg6[%c5_32, %c0_33] : memref<9x128xf32, #tpu.memory_space<vmem>>, vector<1x128xf32>
    %89 = vector.shape_cast %88 : vector<1x128xf32> to vector<128xf32>
    %90 = vector.shape_cast %89 : vector<128xf32> to vector<1x128xf32>
    %91 = vector.broadcast %90 : vector<1x128xf32> to vector<16x128xf32>
    %92 = arith.mulf %54, %91 : vector<16x128xf32>
    %93 = arith.addf %87, %92 : vector<16x128xf32>
    %94 = arith.addf %76, %93 : vector<16x128xf32>
    %c6_34 = arith.constant 6 : index
    %c0_35 = arith.constant 0 : index
    %95 = vector.load %arg6[%c6_34, %c0_35] : memref<9x128xf32, #tpu.memory_space<vmem>>, vector<1x128xf32>
    %96 = vector.shape_cast %95 : vector<1x128xf32> to vector<128xf32>
    %97 = vector.shape_cast %96 : vector<128xf32> to vector<1x128xf32>
    %98 = vector.broadcast %97 : vector<1x128xf32> to vector<16x128xf32>
    %99 = arith.mulf %48, %98 : vector<16x128xf32>
    %c7_36 = arith.constant 7 : index
    %c0_37 = arith.constant 0 : index
    %100 = vector.load %arg6[%c7_36, %c0_37] : memref<9x128xf32, #tpu.memory_space<vmem>>, vector<1x128xf32>
    %101 = vector.shape_cast %100 : vector<1x128xf32> to vector<128xf32>
    %102 = vector.shape_cast %101 : vector<128xf32> to vector<1x128xf32>
    %103 = vector.broadcast %102 : vector<1x128xf32> to vector<16x128xf32>
    %104 = arith.mulf %42, %103 : vector<16x128xf32>
    %105 = arith.addf %99, %104 : vector<16x128xf32>
    %c8 = arith.constant 8 : index
    %c0_38 = arith.constant 0 : index
    %106 = vector.load %arg6[%c8, %c0_38] : memref<9x128xf32, #tpu.memory_space<vmem>>, vector<1x128xf32>
    %107 = vector.shape_cast %106 : vector<1x128xf32> to vector<128xf32>
    %108 = vector.shape_cast %107 : vector<128xf32> to vector<1x128xf32>
    %109 = vector.broadcast %108 : vector<1x128xf32> to vector<16x128xf32>
    %110 = arith.mulf %54, %109 : vector<16x128xf32>
    %111 = arith.addf %105, %110 : vector<16x128xf32>
    %c15_i32 = arith.constant 15 : i32
    %112 = tpu.dynamic_rotate %111 by %c15_i32 dim 0 : vector<16x128xf32>, i32 -> vector<16x128xf32>
    %c1_39 = arith.constant 1 : index
    %c0_40 = arith.constant 0 : index
    %c0_41 = arith.constant 0 : index
    %113 = vector.load %arg8[%c1_39, %c0_40, %c0_41] : memref<2x16x1xf32, #tpu.memory_space<vmem>>, vector<1x16x1xf32>
    %114 = vector.shape_cast %113 : vector<1x16x1xf32> to vector<16x1xf32>
    %115 = vector.broadcast %114 : vector<16x1xf32> to vector<16x128xf32>
    %116 = arith.mulf %112, %115 : vector<16x128xf32>
    %117 = arith.addf %94, %116 : vector<16x128xf32>
    %c0_42 = arith.constant 0 : index
    %c0_43 = arith.constant 0 : index
    %118 = vector.load %arg7[%c0_42, %c0_43] : memref<1x128xf32, #tpu.memory_space<vmem>>, vector<1x128xf32>
    %119 = vector.broadcast %118 : vector<1x128xf32> to vector<16x128xf32>
    %120 = arith.addf %117, %119 : vector<16x128xf32>
    %cst_44 = arith.constant 0.000000e+00 : f32
    %121 = vector.broadcast %cst_44 : f32 to vector<16x128xf32>
    %122 = arith.maximumf %120, %121 : vector<16x128xf32>
    %123 = vector.broadcast %5 : f32 to vector<16x128xf32>
    %124 = arith.mulf %122, %123 : vector<16x128xf32>
    %125 = math.roundeven %124 : vector<16x128xf32>
    %cst_45 = arith.constant 6.400000e+01 : f32
    %126 = vector.broadcast %cst_45 : f32 to vector<16x128xf32>
    %127 = arith.addf %125, %126 : vector<16x128xf32>
    %cst_46 = arith.constant 0.000000e+00 : f32
    %cst_47 = arith.constant 2.550000e+02 : f32
    %128 = vector.broadcast %cst_46 : f32 to vector<16x128xf32>
    %129 = arith.maximumf %128, %127 : vector<16x128xf32>
    %130 = vector.broadcast %cst_47 : f32 to vector<16x128xf32>
    %131 = arith.minimumf %130, %129 : vector<16x128xf32>
    %cst_48 = arith.constant 6.400000e+01 : f32
    %132 = vector.broadcast %cst_48 : f32 to vector<16x128xf32>
    %133 = arith.subf %131, %132 : vector<16x128xf32>
    %134 = vector.broadcast %4 : f32 to vector<16x128xf32>
    %135 = arith.mulf %133, %134 : vector<16x128xf32>
    %136 = arith.truncf %135 : vector<16x128xf32> to vector<16x128xbf16>
    %c0_49 = arith.constant 0 : index
    %c0_50 = arith.constant 0 : index
    %137 = vector.load %arg9[%c0_49, %c0_50] : memref<128x128xbf16, #tpu.memory_space<vmem>>, vector<128x128xbf16>
    %cst_51 = arith.constant dense<0.000000e+00> : vector<16x128xf32>
    %138 = tpu.matmul %136, %137, %cst_51 {dimension_numbers = #tpu.dot_dimension_numbers<[1], [0], [0], [1], [0, 0, 1, 1], [], []>} : vector<16x128xbf16>, vector<128x128xbf16>, vector<16x128xf32> -> vector<16x128xf32>
    %c0_52 = arith.constant 0 : index
    %c0_53 = arith.constant 0 : index
    %139 = vector.load %arg10[%c0_52, %c0_53] : memref<1x128xf32, #tpu.memory_space<vmem>>, vector<1x128xf32>
    %140 = vector.broadcast %139 : vector<1x128xf32> to vector<16x128xf32>
    %141 = arith.addf %138, %140 : vector<16x128xf32>
    %142 = vector.broadcast %7 : f32 to vector<16x128xf32>
    %143 = arith.mulf %141, %142 : vector<16x128xf32>
    %144 = math.roundeven %143 : vector<16x128xf32>
    %cst_54 = arith.constant 6.400000e+01 : f32
    %145 = vector.broadcast %cst_54 : f32 to vector<16x128xf32>
    %146 = arith.addf %144, %145 : vector<16x128xf32>
    %cst_55 = arith.constant 0.000000e+00 : f32
    %cst_56 = arith.constant 2.550000e+02 : f32
    %147 = vector.broadcast %cst_55 : f32 to vector<16x128xf32>
    %148 = arith.maximumf %147, %146 : vector<16x128xf32>
    %149 = vector.broadcast %cst_56 : f32 to vector<16x128xf32>
    %150 = arith.minimumf %149, %148 : vector<16x128xf32>
    %cst_57 = arith.constant 6.400000e+01 : f32
    %151 = vector.broadcast %cst_57 : f32 to vector<16x128xf32>
    %152 = arith.subf %150, %151 : vector<16x128xf32>
    %153 = vector.broadcast %6 : f32 to vector<16x128xf32>
    %154 = arith.mulf %152, %153 : vector<16x128xf32>
    %c8_58 = arith.constant 8 : index
    %155 = memref.load %arg1[%c8_58] : memref<12xf32, #tpu.memory_space<smem>>
    %c9 = arith.constant 9 : index
    %156 = memref.load %arg1[%c9] : memref<12xf32, #tpu.memory_space<smem>>
    %c10 = arith.constant 10 : index
    %157 = memref.load %arg1[%c10] : memref<12xf32, #tpu.memory_space<smem>>
    %c11 = arith.constant 11 : index
    %158 = memref.load %arg1[%c11] : memref<12xf32, #tpu.memory_space<smem>>
    %c0_59 = arith.constant 0 : index
    %c0_60 = arith.constant 0 : index
    %159 = vector.load %arg11[%c0_59, %c0_60] : memref<64x128xbf16, #tpu.memory_space<vmem>>, vector<64x128xbf16>
    %cst_61 = arith.constant dense<0.000000e+00> : vector<16x128xf32>
    %160 = tpu.matmul %22, %159, %cst_61 {dimension_numbers = #tpu.dot_dimension_numbers<[1], [0], [0], [1], [0, 0, 1, 1], [], []>} : vector<16x64xbf16>, vector<64x128xbf16>, vector<16x128xf32> -> vector<16x128xf32>
    %c0_62 = arith.constant 0 : index
    %c0_63 = arith.constant 0 : index
    %161 = vector.load %arg12[%c0_62, %c0_63] : memref<1x128xf32, #tpu.memory_space<vmem>>, vector<1x128xf32>
    %162 = vector.broadcast %161 : vector<1x128xf32> to vector<16x128xf32>
    %163 = arith.addf %160, %162 : vector<16x128xf32>
    %164 = vector.broadcast %158 : f32 to vector<16x128xf32>
    %165 = arith.mulf %163, %164 : vector<16x128xf32>
    %166 = math.roundeven %165 : vector<16x128xf32>
    %cst_64 = arith.constant 6.400000e+01 : f32
    %167 = vector.broadcast %cst_64 : f32 to vector<16x128xf32>
    %168 = arith.addf %166, %167 : vector<16x128xf32>
    %cst_65 = arith.constant 0.000000e+00 : f32
    %cst_66 = arith.constant 2.550000e+02 : f32
    %169 = vector.broadcast %cst_65 : f32 to vector<16x128xf32>
    %170 = arith.maximumf %169, %168 : vector<16x128xf32>
    %171 = vector.broadcast %cst_66 : f32 to vector<16x128xf32>
    %172 = arith.minimumf %171, %170 : vector<16x128xf32>
    %cst_67 = arith.constant 6.400000e+01 : f32
    %173 = vector.broadcast %cst_67 : f32 to vector<16x128xf32>
    %174 = arith.subf %172, %173 : vector<16x128xf32>
    %175 = vector.broadcast %157 : f32 to vector<16x128xf32>
    %176 = arith.mulf %174, %175 : vector<16x128xf32>
    %177 = arith.addf %154, %176 : vector<16x128xf32>
    %178 = vector.broadcast %156 : f32 to vector<16x128xf32>
    %179 = arith.mulf %177, %178 : vector<16x128xf32>
    %180 = math.roundeven %179 : vector<16x128xf32>
    %cst_68 = arith.constant 6.400000e+01 : f32
    %181 = vector.broadcast %cst_68 : f32 to vector<16x128xf32>
    %182 = arith.addf %180, %181 : vector<16x128xf32>
    %cst_69 = arith.constant 0.000000e+00 : f32
    %cst_70 = arith.constant 2.550000e+02 : f32
    %183 = vector.broadcast %cst_69 : f32 to vector<16x128xf32>
    %184 = arith.maximumf %183, %182 : vector<16x128xf32>
    %185 = vector.broadcast %cst_70 : f32 to vector<16x128xf32>
    %186 = arith.minimumf %185, %184 : vector<16x128xf32>
    %cst_71 = arith.constant 6.400000e+01 : f32
    %187 = vector.broadcast %cst_71 : f32 to vector<16x128xf32>
    %188 = arith.subf %186, %187 : vector<16x128xf32>
    %189 = vector.broadcast %155 : f32 to vector<16x128xf32>
    %190 = arith.mulf %188, %189 : vector<16x128xf32>
    %c0_72 = arith.constant 0 : index
    %c0_73 = arith.constant 0 : index
    %191 = vector.load %arg13[%c0_72, %c0_73] : memref<16x128xf32, #tpu.memory_space<vmem>>, vector<16x128xf32>
    tpu.vector_store %arg13[%c0_72, %c0_73], %190 {strides = array<i32>} : memref<16x128xf32, #tpu.memory_space<vmem>>, vector<16x128xf32>,
    return
  }
  func.func @transform_0(%arg0: i32) -> i32 {
    %c0_i32 = arith.constant 0 : i32
    %c0_i32_0 = arith.constant 0 : i32
    return %c0_i32 : i32
  }
  func.func @transform_1(%arg0: i32) -> (i32, i32) {
    %c0_i32 = arith.constant 0 : i32
    %c0_i32_0 = arith.constant 0 : i32
    return %arg0, %c0_i32 : i32, i32
  }
  func.func @transform_2(%arg0: i32) -> (i32, i32) {
    %c0_i32 = arith.constant 0 : i32
    %c0_i32_0 = arith.constant 0 : i32
    %c0_i32_1 = arith.constant 0 : i32
    return %c0_i32, %c0_i32_0 : i32, i32
  }
  func.func @transform_3(%arg0: i32) -> (i32, i32) {
    %c0_i32 = arith.constant 0 : i32
    %c0_i32_0 = arith.constant 0 : i32
    %c0_i32_1 = arith.constant 0 : i32
    return %c0_i32, %c0_i32_0 : i32, i32
  }
  func.func @transform_4(%arg0: i32) -> (i32, i32) {
    %c0_i32 = arith.constant 0 : i32
    %c0_i32_0 = arith.constant 0 : i32
    %c0_i32_1 = arith.constant 0 : i32
    return %c0_i32, %c0_i32_0 : i32, i32
  }
  func.func @transform_5(%arg0: i32) -> (i32, i32) {
    %c0_i32 = arith.constant 0 : i32
    %c0_i32_0 = arith.constant 0 : i32
    %c0_i32_1 = arith.constant 0 : i32
    return %c0_i32, %c0_i32_0 : i32, i32
  }
  func.func @transform_6(%arg0: i32) -> (i32, i32) {
    %c0_i32 = arith.constant 0 : i32
    %c0_i32_0 = arith.constant 0 : i32
    %c0_i32_1 = arith.constant 0 : i32
    return %c0_i32, %c0_i32_0 : i32, i32
  }
  func.func @transform_7(%arg0: i32) -> (i32, i32, i32) {
    %c0_i32 = arith.constant 0 : i32
    %c0_i32_0 = arith.constant 0 : i32
    %c0_i32_1 = arith.constant 0 : i32
    %c0_i32_2 = arith.constant 0 : i32
    return %c0_i32, %c0_i32_0, %c0_i32_1 : i32, i32, i32
  }
  func.func @transform_8(%arg0: i32) -> (i32, i32) {
    %c0_i32 = arith.constant 0 : i32
    %c0_i32_0 = arith.constant 0 : i32
    %c0_i32_1 = arith.constant 0 : i32
    return %c0_i32, %c0_i32_0 : i32, i32
  }
  func.func @transform_9(%arg0: i32) -> (i32, i32) {
    %c0_i32 = arith.constant 0 : i32
    %c0_i32_0 = arith.constant 0 : i32
    %c0_i32_1 = arith.constant 0 : i32
    return %c0_i32, %c0_i32_0 : i32, i32
  }
  func.func @transform_10(%arg0: i32) -> (i32, i32) {
    %c0_i32 = arith.constant 0 : i32
    %c0_i32_0 = arith.constant 0 : i32
    %c0_i32_1 = arith.constant 0 : i32
    return %c0_i32, %c0_i32_0 : i32, i32
  }
  func.func @transform_11(%arg0: i32) -> (i32, i32) {
    %c0_i32 = arith.constant 0 : i32
    %c0_i32_0 = arith.constant 0 : i32
    %c0_i32_1 = arith.constant 0 : i32
    return %c0_i32, %c0_i32_0 : i32, i32
  }
  func.func @transform_12(%arg0: i32) -> (i32, i32) {
    %c0_i32 = arith.constant 0 : i32
    %c0_i32_0 = arith.constant 0 : i32
    return %arg0, %c0_i32 : i32, i32
  }
}

</mosaic_0001>

<bundles_post_ra>
// kernel: qfw_block_forward.1
= control target key start
LH: loop header
LB: loop body
LE: loop exit
PB: predicated region body
PF: predicated region fallthrough
CT: control target
= control target key end

     0   :  { %17 = vsyncpa [#allocation3], 0  ;;  %s1011_s0 = inlined_call_operand.vmem [shape: f32[12], index: 0, kind: input, shape index: {}]   ;;  %s1012_s1 = inlined_call_operand.vmem [shape: f32[16,64], index: 1, kind: input, shape index: {}]   ;;  %s1013_s2 = inlined_call_operand.vmem [shape: bf16[64,128], index: 2, kind: input, shape index: {}]   ;;  %s1014_s3 = inlined_call_operand.vmem [shape: f32[1,128], index: 3, kind: input, shape index: {}]   ;;  %s1015_s4 = inlined_call_operand.vmem [shape: f32[2,128], index: 4, kind: input, shape index: {}]   ;;  %s1016_s5 = inlined_call_operand.vmem [shape: f32[9,128], index: 5, kind: input, shape index: {}]   ;;  %s1017_s6 = inlined_call_operand.vmem [shape: f32[1,128], index: 6, kind: input, shape index: {}]   ;;  %s1018_s7 = inlined_call_operand.vmem [shape: f32[2,16,1], index: 7, kind: input, shape index: {}]   ;;  %s1019_s8 = inlined_call_operand.vmem [shape: bf16[128,128], index: 8, kind: input, shape index: {}]   ;;  %s1020_s9 = inlined_call_operand.vmem [shape: f32[1,128], index: 9, kind: input, shape index: {}]   ;;  %s1021_s10 = inlined_call_operand.vmem [shape: bf16[64,128], index: 10, kind: input, shape index: {}]   ;;  %s1022_s11 = inlined_call_operand.vmem [shape: f32[1,128], index: 11, kind: input, shape index: {}]   ;;  %s1023_s12 = inlined_call_operand.vmem [shape: f32[16,128], index: 12, kind: output, shape index: {}]  }
   0x1   :  { %s24_s23 = sshll.u32 %s1011_s0, 4  ;;  %s25_s23 = int_to_ptr.vmem [resolvable:$true] %s24_s23 }
   0x2   :  { %s764_s24 = scalar_lea.vmem %s25_s23, 16  ;;  %p769_p1 = scmp.lt.s32.totalorder %s25_s23, %s25_s23 }
   0x3   :  { %p765_p0 = scmp.ne.s32.totalorder %s25_s23, %s764_s24  ;;  %p770_p2 = scmp.lt.s32.totalorder %s764_s24, %s764_s24 }
   0x5   :  { %p771_p3 = por %p770_p2, %p769_p1 }
   0x7   :  { %p772_p4 = pnand %p771_p3, %p765_p0 }
   0x9   :  { %775 = shalt.err (!%p772_p4)
}
   0xa   :  { %s778_s25 = smov [#allocation2]  }
   0xb   :  { %27 = dma.vmem_to_smem %s25_s23, 16, %s778_s25, [#allocation3]  }
   0xc   :  { %776 = dma.done.wait [#allocation3], 16  }
   0xd   :  { %777 = vsyncadd [#allocation3], 4294967280 }
   0xe   :  { %53 = sfence }
   0xf   :  { %v748_v0 = vld [vmem:[%s1013_s2] sm:$0xff]   ;;  %v779_v1 = vmov 0.0   ;;  %v749_v2 = vld [vmem:[%s1013_s2 + $0x8] sm:$0xff]   ;;  %vm780_vm0 = vmmov 0   ;;  %s607_s29 = sld [smem:[#allocation2 + $0x1]]  ;;  %v750_v3 = vld [vmem:[%s1013_s2 + $0x10] sm:$0xff]  }
  0x10   :  { %684 = vmatprep.subr.bf16.mxu0 %v779_v1  ;;  %696 = vmatprep.subr.bf16.mxu1 %v779_v1  ;;  %v63_v4 = vld [vmem:[%s1012_s1] sm:$0xff]  ;;  %v64_v5 = vld [vmem:[%s1012_s1 + $0x8] sm:$0xff]  ;;  %v751_v6 = vld [vmem:[%s1013_s2 + $0x18] sm:$0xff]   ;;  %s55_s20 = sld [smem:[#allocation2]]  ;;  %vm121_vm1 = vcmask 523264   ;;  %v781_v24 = vmov 0  }
  0x11   :  { %685 = vmatpush3.bf16.msra.mxu0 %v748_v0  ;;  %692 = vmatprep.mubr.msk.bf16.mxu0 %vm780_vm0, %v779_v1  ;;  %s609_s1 = sld [smem:[#allocation2 + $0x3]]  ;;  %v616_v25 = vld [vmem:[%s1014_s3] ss:$0 sm:$0xff]  ;;  %s608_s22 = sld [smem:[#allocation2 + $0x2]]  ;;  %v239_v49 = vld [vmem:[%s1018_s7 + $0x8] sm:$0xff]  ;;  %v635_v52 = vld [vmem:[%s1018_s7 + $0x10] sm:$0xff] }
  0x12   :  { %686 = vmatprep.subr.bf16.mxu0 %v779_v1  ;;  %712 = vmatprep.mubr.msk.bf16.mxu1 %vm780_vm0, %v779_v1  ;;  %s782_s3 = smov 112   ;;  %s783_s23 = smov 16   ;;  %v238_v51 = vld [vmem:[%s1018_s7] sm:$0xff]  ;;  %v636_v53 = vld [vmem:[%s1018_s7 + $0x18] sm:$0xff]  ;;  %v753_v55 = vld [vmem:[%s1019_s8 + $0x8] sm:$0xff]  }
  0x13   :  { %747 = vset.pattern.permute.xlu1 %v781_v24  ;;  %746 = vset.pattern.permute.xlu0 %v781_v24  ;;  %v752_v54 = vld [vmem:[%s1019_s8] sm:$0xff]   ;;  %v754_v56 = vld [vmem:[%s1019_s8 + $0x10] sm:$0xff]   ;;  %v755_v57 = vld [vmem:[%s1019_s8 + $0x18] sm:$0xff]   ;;  %s611_s28 = sld [smem:[#allocation2 + $0x5]]  ;;  %s610_s30 = sld [smem:[#allocation2 + $0x4]] }
  0x14   :  { %697 = vmatpush3.bf16.msra.mxu1 %v752_v54  ;;  %v756_v58 = vld [vmem:[%s1021_s10] sm:$0xff]   ;;  %v758_v60 = vld [vmem:[%s1021_s10 + $0x8] sm:$0xff]   ;;  %v760_v62 = vld [vmem:[%s1021_s10 + $0x10] sm:$0xff]   ;;  %s613_s15 = sld [smem:[#allocation2 + $0x7]]  ;;  %s612_s17 = sld [smem:[#allocation2 + $0x6]] }
  0x15   :  { %687 = vmatpush3.bf16.msra.mxu0 %v749_v2  ;;  %v65_v7 = vstv %s607_s29  ;;  %698 = vmatprep.subr.bf16.mxu1 %v779_v1  ;;  %v757_v59 = vld [vmem:[%s1019_s8 + $0x20] sm:$0xff]   ;;  %v759_v61 = vld [vmem:[%s1019_s8 + $0x28] sm:$0xff]   ;;  %v761_v63 = vld [vmem:[%s1019_s8 + $0x30] sm:$0xff]   ;;  %s652_s18 = sld [smem:[#allocation2 + $0x9]] }
  0x16   :  { %688 = vmatprep.subr.bf16.mxu0 %v779_v1  ;;  %v66_v8 = vmul.f32 %v65_v7, %v63_v4  ;;  %v67_v9 = vmul.f32 %v65_v7, %v64_v5  ;;  %v78_v18 = vstv %s55_s20  ;;  %v762_v0 = vld [vmem:[%s1021_s10 + $0x18] sm:$0xff]   ;;  %v624_v4 = vld [vmem:[%s1015_s4] ss:$0 sm:$0xff]  ;;  %v632_v7 = vld [vmem:[%s1016_s5 + $0x6] ss:$0 sm:$0xff] }
  0x17   :  { %v168_v29 = vstv %s609_s1  ;;  %v181_v44 = vstv %s608_s22  ;;  %v763_v2 = vld [vmem:[%s1019_s8 + $0x38] sm:$0xff]   ;;  %v629_v24 = vld [vmem:[%s1016_s5 + $0x3] ss:$0 sm:$0xff] }
  0x18   :  { %v728_v10 = vround.rtne.f32 %v66_v8  ;;  %v729_v11 = vround.rtne.f32 %v67_v9  ;;  %699 = vmatpush3.bf16.msra.mxu1 %v753_v55  ;;  %v625_v9 = vld [vmem:[%s1015_s4 + $0x1] ss:$0 sm:$0xff] }
  0x19   :  { %689 = vmatpush3.bf16.msra.mxu0 %v750_v3  ;;  %700 = vmatprep.subr.bf16.mxu1 %v779_v1 }
  0x1a   :  { %690 = vmatprep.subr.bf16.mxu0 %v779_v1  ;;  %v70_v12 = vadd.f32 64.0, %v728_v10  ;;  %v71_v13 = vadd.f32 64.0, %v729_v11  ;;  %v627_v10 = vld [vmem:[%s1016_s5 + $0x1] ss:$0 sm:$0xff]  ;;  %v633_v11 = vld [vmem:[%s1016_s5 + $0x7] ss:$0 sm:$0xff] }
  0x1c   :  { %v72_v14 = vmax.f32 %v70_v12, 0.0  ;;  %v73_v15 = vmax.f32 %v71_v13, 0.0  ;;  %701 = vmatpush3.bf16.msra.mxu1 %v754_v56 }
  0x1d   :  { %691 = vmatpush3.bf16.msra.mxu0 %v751_v6  ;;  %702 = vmatprep.subr.bf16.mxu1 %v779_v1  ;;  %v626_v6 = vld [vmem:[%s1016_s5] ss:$0 sm:$0xff] }
  0x1e   :  { %716 = vmatprep.subr.bf16.mxu0 %v779_v1  ;;  %v74_v16 = vmin.f32 %v72_v14, 255.0  ;;  %v75_v17 = vmin.f32 %v73_v15, 255.0 }
  0x20   :  { %v614_v19 = vadd.f32 -64.0, %v74_v16  ;;  %v615_v20 = vadd.f32 -64.0, %v75_v17  ;;  %703 = vmatpush3.bf16.msra.mxu1 %v755_v57 }
  0x21   :  { %704 = vmatprep.subr.bf16.mxu1 %v779_v1 }
  0x22   :  { %v79_v21 = vmul.f32 %v614_v19, %v78_v18  ;;  %v80_v22 = vmul.f32 %v615_v20, %v78_v18  ;;  %v628_v19 = vld [vmem:[%s1016_s5 + $0x2] ss:$0 sm:$0xff]  ;;  %v634_v20 = vld [vmem:[%s1016_s5 + $0x8] ss:$0 sm:$0xff] }
  0x24   :  { %v880_v23 = vpack.c.bf16 %v80_v22, %v79_v21  ;;  %705 = vmatpush3.bf16.msra.mxu1 %v757_v59 }
  0x25   :  { %706 = vmatprep.subr.bf16.mxu1 %v779_v1 }
  0x26   :  { %693 = vmatmul.mubr.msk.bf16.vlgmr.msra.gmra.mrb[0].mxu0 %vm121_vm1, %v880_v23 }
  0x27   :  { %724 = vmatprep.mubr.msk.bf16.mxu0 %vm780_vm0, %v779_v1  ;;  %717 = vmatpush3.bf16.msra.mxu0 %v756_v58 }
  0x28   :  { %718 = vmatprep.subr.bf16.mxu0 %v779_v1  ;;  %707 = vmatpush3.bf16.msra.mxu1 %v759_v61 }
  0x29   :  { %708 = vmatprep.subr.bf16.mxu1 %v779_v1 }
  0x2b   :  { %719 = vmatpush3.bf16.msra.mxu0 %v758_v60 }
  0x2c   :  { %720 = vmatprep.subr.bf16.mxu0 %v779_v1  ;;  %709 = vmatpush3.bf16.msra.mxu1 %v761_v63 }
  0x2d   :  { %710 = vmatprep.subr.bf16.mxu1 %v779_v1 }
  0x2f   :  { %721 = vmatpush3.bf16.msra.mxu0 %v760_v62 }
  0x30   :  { %722 = vmatprep.subr.bf16.mxu0 %v779_v1  ;;  %711 = vmatpush3.bf16.msra.mxu1 %v763_v2 }
  0x33   :  { %723 = vmatpush3.bf16.msra.mxu0 %v762_v0 }
  0x36   :  { %725 = vmatmul.mubr.msk.bf16.vlgmr.msra.gmra.mrb[4].mxu0 %vm121_vm1, %v880_v23  ;;  %v233_v23 = vlaneseq }
  0xf9   :  { %v159_v26 = vpop.f32.mrb[0].mxu0 }
  0xfa   :  { %v160_v27 = vadd.f32 %v616_v25, %v159_v26  ;;  %v694_v28 = vpop.f32.mrb[1].mxu0 }
  0xfb   :  { %v162_v30 = vpop.f32.mrb[2].mxu0 }
  0xfc   :  { %v166_v31 = vmax.f32 %v160_v27, 0.0  ;;  %v163_v32 = vadd.f32 %v616_v25, %v162_v30  ;;  %v695_v33 = vpop.f32.mrb[3].mxu0  ;;  %v630_v30 = vld [vmem:[%s1016_s5 + $0x4] ss:$0 sm:$0xff] }
  0xfe   :  { %v169_v34 = vmul.f32 %v168_v29, %v166_v31  ;;  %v167_v35 = vmax.f32 %v163_v32, 0.0 }
 0x100   :  { %v730_v36 = vround.rtne.f32 %v169_v34  ;;  %v170_v37 = vmul.f32 %v168_v29, %v167_v35 }
 0x102   :  { %v173_v38 = vadd.f32 64.0, %v730_v36  ;;  %v731_v39 = vround.rtne.f32 %v170_v37  ;;  %v234_v36 = vshrl.u32 %v233_v23, 7 }
 0x104   :  { %v175_v40 = vmax.f32 %v173_v38, 0.0  ;;  %v174_v41 = vadd.f32 64.0, %v731_v39  ;;  %vm235_vm2 = vcmp.lt.s32.totalorder %v234_v36, 1  ;;  %vm306_vm3 = vcmp.lt.s32.totalorder %v234_v36, 7 }
 0x106   :  { %v177_v42 = vmin.f32 %v175_v40, 255.0  ;;  %v176_v43 = vmax.f32 %v174_v41, 0.0 }
 0x108   :  { %v622_v45 = vadd.f32 -64.0, %v177_v42  ;;  %v178_v46 = vmin.f32 %v176_v43, 255.0 }
 0x10a   :  { %v889_v47 = vmul.f32 %v622_v45, %v181_v44  ;;  %v623_v48 = vadd.f32 -64.0, %v178_v46 }
 0x10c   :  { %195 = vrot.lane.b32.xlu1 %v889_v47, %s782_s3  ;;  %184 = vrot.lane.b32.xlu0 %v889_v47, %s783_s23  ;;  %v896_v50 = vmul.f32 %v623_v48, %v181_v44  ;;  %v218_v16 = vmul.f32 %v627_v10, %v889_v47  ;;  %v291_v17 = vmul.f32 %v633_v11, %v889_v47  ;;  %v631_v44 = vld [vmem:[%s1016_s5 + $0x5] ss:$0 sm:$0xff] }
 0x10d   :  { %v264_v43 = vmul.f32 %v630_v30, %v889_v47 }
 0x10e   :  { %v219_v31 = vmul.f32 %v627_v10, %v896_v50  ;;  %v292_v32 = vmul.f32 %v633_v11, %v896_v50  ;;  %v265_v45 = vmul.f32 %v630_v30, %v896_v50 }
 0x110   :  { %247 = vperm.xlu1 %747, %v239_v49   ;;  %186 = vrot.lane.b32.xlu0 %v896_v50, %s783_s23 }
 0x114   :  { %197 = vrot.lane.b32.xlu1 %v896_v50, %s782_s3  ;;  %242 = vperm.xlu0 %746, %v238_v51  }
 0x118   :  { %314 = vperm.xlu1 %747, %v635_v52   ;;  %319 = vperm.xlu0 %746, %v636_v53  }
 0x17e   :  { %v185_v3 = vpop.permute.xlu0 %184  ;;  %v196_v8 = vpop.permute.xlu1 %195 }
 0x17f   :  { %v193_v5 = vmul.f32 %v624_v4, %v185_v3  ;;  %v204_v15 = vmul.f32 %v625_v9, %v196_v8  ;;  %v637_v8 = vld [vmem:[%s1017_s6] ss:$0 sm:$0xff]  ;;  %s654_s6 = sld [smem:[#allocation2 + $0xb]] }
 0x181   :  { %v211_v12 = vmul.f32 %v626_v6, %v193_v5  ;;  %v284_v13 = vmul.f32 %v632_v7, %v193_v5  ;;  %v227_v27 = vmul.f32 %v628_v19, %v204_v15  ;;  %v300_v28 = vmul.f32 %v634_v20, %v204_v15 }
 0x182   :  { %v187_v1 = vpop.permute.xlu0 %186  ;;  %v257_v34 = vmul.f32 %v629_v24, %v193_v5  ;;  %v273_v57 = vmul.f32 %v631_v44, %v204_v15 }
 0x183   :  { %v194_v14 = vmul.f32 %v624_v4, %v187_v1  ;;  %v220_v21 = vadd.f32 %v218_v16, %v211_v12  ;;  %v293_v22 = vadd.f32 %v291_v17, %v284_v13  ;;  %v337_v12 = vstv %s611_s28 }
 0x184   :  { %v266_v52 = vadd.f32 %v264_v43, %v257_v34 }
 0x185   :  { %v212_v25 = vmul.f32 %v626_v6, %v194_v14  ;;  %v285_v26 = vmul.f32 %v632_v7, %v194_v14  ;;  %v229_v35 = vadd.f32 %v227_v27, %v220_v21  ;;  %v302_v37 = vadd.f32 %v300_v28, %v293_v22 }
 0x186   :  { %v258_v42 = vmul.f32 %v629_v24, %v194_v14  ;;  %v275_v62 = vadd.f32 %v273_v57, %v266_v52 }
 0x187   :  { %v221_v38 = vadd.f32 %v219_v31, %v212_v25  ;;  %v294_v39 = vadd.f32 %v292_v32, %v285_v26  ;;  %v231_v53 = vrot.slane %v229_v35, 7  ;;  %v304_v55 = vrot.slane %v302_v37, 1  ;;  %v559_v31 = vpop.f32.mrb[4].mxu0  ;;  %v655_v35 = vld [vmem:[%s1022_s11] ss:$0 sm:$0xff]  ;;  %s653_s11 = sld [smem:[#allocation2 + $0xa]] }
 0x188   :  { %v267_v58 = vadd.f32 %v265_v45, %v258_v42  ;;  %v350_v25 = vstv %s610_s30  ;;  %v726_v32 = vpop.f32.mrb[5].mxu0  ;;  %v560_v36 = vadd.f32 %v655_v35, %v559_v31  ;;  %v566_v37 = vstv %s654_s6 }
 0x18f   :  { %v248_v18 = vpop.permute.xlu1 %247 }
 0x193   :  { %v198_v29 = vpop.permute.xlu1 %197  ;;  %v243_v46 = vpop.permute.xlu0 %242 }
 0x194   :  { %v205_v33 = vmul.f32 %v625_v9, %v198_v29 }
 0x196   :  { %v228_v40 = vmul.f32 %v628_v19, %v205_v33  ;;  %v301_v41 = vmul.f32 %v634_v20, %v205_v33  ;;  %v274_v51 = vmul.f32 %v631_v44, %v205_v33  ;;  %v562_v33 = vpop.f32.mrb[6].mxu0  ;;  %v640_v44 = vld [vmem:[%s1020_s9] ss:$0 sm:$0xff]  ;;  %s651_s9 = sld [smem:[#allocation2 + $0x8]] }
 0x197   :  { %v315_v2 = vpop.permute.xlu1 %314  ;;  %v320_v3 = vpop.permute.xlu0 %319 }
 0x198   :  { %v230_v48 = vadd.f32 %v228_v40, %v221_v38  ;;  %v303_v49 = vadd.f32 %v301_v41, %v294_v39  ;;  %v276_v0 = vadd.f32 %v274_v51, %v267_v58  ;;  %v727_v34 = vpop.f32.mrb[7].mxu0  ;;  %v567_v38 = vmul.f32 %v566_v37, %v560_v36 }
 0x199   :  { %v563_v39 = vadd.f32 %v655_v35, %v562_v33 }
 0x19a   :  { %v232_v54 = vrot.slane %v230_v48, 7  ;;  %v305_v56 = vrot.slane %v303_v49, 1  ;;  %v736_v40 = vround.rtne.f32 %v567_v38 }
 0x19b   :  { %v568_v41 = vmul.f32 %v566_v37, %v563_v39 }
 0x19c   :  { %v236_v47 = vsel %vm235_vm2, %v231_v53, %v232_v54  ;;  %v237_v59 = vsel %vm235_vm2, %v232_v54, %v231_v53  ;;  %v307_v60 = vsel %vm306_vm3, %v304_v55, %v305_v56  ;;  %v308_v61 = vsel %vm306_vm3, %v305_v56, %v304_v55 }
 0x19d   :  { %v250_v50 = vmul.f32 %v243_v46, %v237_v59  ;;  %v251_v63 = vmul.f32 %v248_v18, %v236_v47  ;;  %v322_v5 = vmul.f32 %v315_v2, %v307_v60  ;;  %v323_v7 = vmul.f32 %v320_v3, %v308_v61 }
 0x19e   :  { %v571_v42 = vadd.f32 64.0, %v736_v40  ;;  %v737_v43 = vround.rtne.f32 %v568_v41  ;;  %v466_v46 = vstv %s613_s15  ;;  %v579_v2 = vstv %s653_s11 }
 0x19f   :  { %v277_v4 = vadd.f32 %v275_v62, %v250_v50  ;;  %v278_v6 = vadd.f32 %v276_v0, %v251_v63 }
 0x1a0   :  { %v573_v48 = vmax.f32 %v571_v42, 0.0  ;;  %v572_v49 = vadd.f32 64.0, %v737_v43 }
 0x1a1   :  { %v324_v1 = vadd.f32 %v322_v5, %v277_v4  ;;  %v325_v9 = vadd.f32 %v323_v7, %v278_v6  ;;  %v479_v5 = vstv %s612_s17 }
 0x1a2   :  { %v575_v57 = vmin.f32 %v573_v48, 255.0  ;;  %v574_v58 = vmax.f32 %v572_v49, 0.0 }
 0x1a3   :  { %v333_v10 = vadd.f32 %v637_v8, %v324_v1  ;;  %v334_v11 = vadd.f32 %v637_v8, %v325_v9 }
 0x1a4   :  { %v661_v62 = vadd.f32 -64.0, %v575_v57  ;;  %v576_v50 = vmin.f32 %v574_v58, 255.0 }
 0x1a5   :  { %v335_v13 = vmax.f32 %v333_v10, 0.0  ;;  %v336_v14 = vmax.f32 %v334_v11, 0.0  ;;  %v584_v11 = vstv %s652_s18 }
 0x1a6   :  { %v580_v6 = vmul.f32 %v661_v62, %v579_v2  ;;  %v662_v7 = vadd.f32 -64.0, %v576_v50 }
 0x1a7   :  { %v338_v15 = vmul.f32 %v337_v12, %v335_v13  ;;  %v339_v16 = vmul.f32 %v337_v12, %v336_v14 }
 0x1a8   :  { %v581_v12 = vmul.f32 %v662_v7, %v579_v2 }
 0x1a9   :  { %v732_v17 = vround.rtne.f32 %v338_v15  ;;  %v733_v18 = vround.rtne.f32 %v339_v16 }
 0x1ab   :  { %v342_v19 = vadd.f32 64.0, %v732_v17  ;;  %v343_v20 = vadd.f32 64.0, %v733_v18 }
 0x1ad   :  { %v344_v21 = vmax.f32 %v342_v19, 0.0  ;;  %v345_v22 = vmax.f32 %v343_v20, 0.0 }
 0x1af   :  { %v346_v23 = vmin.f32 %v344_v21, 255.0  ;;  %v347_v24 = vmin.f32 %v345_v22, 255.0 }
 0x1b1   :  { %v638_v26 = vadd.f32 -64.0, %v346_v23  ;;  %v639_v27 = vadd.f32 -64.0, %v347_v24 }
 0x1b3   :  { %v351_v28 = vmul.f32 %v638_v26, %v350_v25  ;;  %v352_v29 = vmul.f32 %v639_v27, %v350_v25  ;;  %v597_v25 = vstv %s651_s9 }
 0x1b5   :  { %v353_v30 = vpack.c.bf16 %v352_v29, %v351_v28 }
 0x1b7   :  { %713 = vmatmul.mubr.bf16.vlgmr.msra.gmra.mrb[0].mxu1 %v353_v30 }
 0x28a   :  { %v459_v45 = vpop.f32.mrb[0].mxu1 }
 0x28b   :  { %v460_v51 = vadd.f32 %v640_v44, %v459_v45  ;;  %v714_v52 = vpop.f32.mrb[1].mxu1 }
 0x28c   :  { %v462_v53 = vpop.f32.mrb[2].mxu1 }
 0x28d   :  { %v467_v54 = vmul.f32 %v466_v46, %v460_v51  ;;  %v463_v55 = vadd.f32 %v640_v44, %v462_v53  ;;  %v715_v56 = vpop.f32.mrb[3].mxu1 }
 0x28f   :  { %v734_v47 = vround.rtne.f32 %v467_v54  ;;  %v468_v59 = vmul.f32 %v466_v46, %v463_v55 }
 0x291   :  { %v471_v60 = vadd.f32 64.0, %v734_v47  ;;  %v735_v61 = vround.rtne.f32 %v468_v59 }
 0x293   :  { %v473_v63 = vmax.f32 %v471_v60, 0.0  ;;  %v472_v0 = vadd.f32 64.0, %v735_v61 }
 0x295   :  { %v475_v3 = vmin.f32 %v473_v63, 255.0  ;;  %v474_v4 = vmax.f32 %v472_v0, 0.0 }
 0x297   :  { %v649_v8 = vadd.f32 -64.0, %v475_v3  ;;  %v476_v1 = vmin.f32 %v474_v4, 255.0 }
 0x299   :  { %v480_v9 = vmul.f32 %v649_v8, %v479_v5  ;;  %v650_v10 = vadd.f32 -64.0, %v476_v1 }
 0x29b   :  { %v582_v13 = vadd.f32 %v580_v6, %v480_v9  ;;  %v481_v14 = vmul.f32 %v650_v10, %v479_v5 }
 0x29d   :  { %v585_v15 = vmul.f32 %v584_v11, %v582_v13  ;;  %v583_v16 = vadd.f32 %v581_v12, %v481_v14 }
 0x29f   :  { %v738_v17 = vround.rtne.f32 %v585_v15  ;;  %v586_v18 = vmul.f32 %v584_v11, %v583_v16 }
 0x2a1   :  { %v589_v19 = vadd.f32 64.0, %v738_v17  ;;  %v739_v20 = vround.rtne.f32 %v586_v18 }
 0x2a3   :  { %v591_v21 = vmax.f32 %v589_v19, 0.0  ;;  %v590_v22 = vadd.f32 64.0, %v739_v20 }
 0x2a5   :  { %v593_v23 = vmin.f32 %v591_v21, 255.0  ;;  %v592_v24 = vmax.f32 %v590_v22, 0.0 }
 0x2a7   :  { %v663_v26 = vadd.f32 -64.0, %v593_v23  ;;  %v594_v27 = vmin.f32 %v592_v24, 255.0 }
 0x2a9   :  { %v598_v28 = vmul.f32 %v663_v26, %v597_v25  ;;  %v664_v29 = vadd.f32 -64.0, %v594_v27 }
 0x2ab   :  { %600 = vst [vmem:[%s1023_s12] sm:$0xff] %v598_v28  ;;  %v599_v30 = vmul.f32 %v664_v29, %v597_v25 }
 0x2ad   :  { %601 = vst [vmem:[%s1023_s12 + $0x8] sm:$0xff] %v599_v30 }
 0x2ae   :  { %606 = vsyncpa [#allocation3], 1 }

</bundles_post_ra>
